<compile_context>
chip_gen: v7x
topology: tpu7x:2x2x1
jax: 0.10.0
libtpu: 0.0.40
codegen_flags: <defaults>
</compile_context>

<pallas_src>
import functools

import jax
import jax.numpy as jnp
from jax.experimental import pallas as pl
from jax.experimental.pallas import tpu as pltpu

REPARAM_NOISE = 1e-6
HEAD_PAD = 128          # lane-dense fused head width: [ mean | std | zero pad ]


def _round_up(x, m):
    return (x + m - 1) // m * m


def _actor_kernel(x_ref, w1b_ref, w2b_ref, whb_ref, out_ref,
                  *, d_in, fc1, fc2, n_act):
    x = x_ref[...]                                                  # [BM, d_in] f32

    # fc1 + relu   (W1 in rows 0..d_in-1, bias in row d_in of the slab)
    h1 = jnp.dot(x, w1b_ref[:d_in, :],
                 preferred_element_type=jnp.float32) + w1b_ref[d_in:d_in + 1, :]
    h1 = jnp.maximum(h1, 0.0)

    # fc2 + relu
    h2 = jnp.dot(h1, w2b_ref[:fc1, :],
                 preferred_element_type=jnp.float32) + w2b_ref[fc1:fc1 + 1, :]
    h2 = jnp.maximum(h2, 0.0)

    # fused mean|std head, zero-padded to HEAD_PAD lanes (one MXU push, one store)
    head = jnp.dot(h2, whb_ref[:fc2, :],
                   preferred_element_type=jnp.float32) + whb_ref[fc2:fc2 + 1, :]

    # clamp only the std columns [n_act, 2*n_act); mean / pad columns untouched
    col = jax.lax.broadcasted_iota(jnp.int32, head.shape, 1)
    is_std = (col >= n_act) & (col < 2 * n_act)
    head = jnp.where(is_std, jnp.clip(head, REPARAM_NOISE, 1.0), head)

    out_ref[...] = head.astype(out_ref.dtype)


def pack_params(params):
    """Pack per-matmul [W; b] slabs (rows padded to a multiple of 8) and fuse the
    mean/std heads into one slab zero-padded to HEAD_PAD output lanes."""
    def stack_wb(w, b, out_cols=None):
        rows_in, cols_in = w.shape
        cols = cols_in if out_cols is None else out_cols
        rows = _round_up(rows_in + 1, 8)
        slab = jnp.zeros((rows, cols), jnp.float32)
        slab = slab.at[:rows_in, :cols_in].set(w.astype(jnp.float32))
        slab = slab.at[rows_in, :cols_in].set(b.reshape(-1).astype(jnp.float32))
        return slab

    wh = jnp.concatenate([params["wm"], params["ws"]], axis=1)      # [fc2, 2*n_act]
    bh = jnp.concatenate([params["bm"], params["bs"]], axis=1)      # [1, 2*n_act]
    # TODO(synk): a bf16 variant of these slabs would halve weight HBM traffic and
    # double MXU rate; kept f32 to preserve the PyTorch module's f32 numerics.
    return {
        "w1b": stack_wb(params["w1"], params["b1"]),
        "w2b": stack_wb(params["w2"], params["b2"]),
        "whb": stack_wb(wh, bh, out_cols=HEAD_PAD),
    }


@functools.partial(jax.jit, static_argnames=("n_actions",))
def actor_forward(state, packed, n_actions):
    """ActorNetwork.forward: state [B, D_in] -> (mean [B, n_actions], std [B, n_actions])."""
    w1b, w2b, whb = packed["w1b"], packed["w2b"], packed["whb"]
    B, d_in = state.shape
    fc1 = w1b.shape[1]
    fc2 = w2b.shape[1]
    assert 2 * n_actions <= HEAD_PAD

    # Batch M-tile: up to 128 rows, multiple of 8; grid axis is "parallel"
    # (megacore sharding on v7x; no-op on single-TC chips).
    bm = min(128, _round_up(B, 8))
    b_pad = _round_up(B, bm)
    x = state.astype(jnp.float32)
    if b_pad != B:
        x = jnp.pad(x, ((0, b_pad - B), (0, 0)))

    kernel = functools.partial(_actor_kernel, d_in=d_in, fc1=fc1, fc2=fc2,
                               n_act=n_actions)

    out = pl.pallas_call(
        kernel,
        out_shape=jax.ShapeDtypeStruct((b_pad, HEAD_PAD), jnp.float32),
        grid=(b_pad // bm,),
        in_specs=[
            pl.BlockSpec((bm, d_in), lambda i: (i, 0)),      # state tile
            pl.BlockSpec(w1b.shape, lambda i: (0, 0)),       # VMEM-resident weights
            pl.BlockSpec(w2b.shape, lambda i: (0, 0)),
            pl.BlockSpec(whb.shape, lambda i: (0, 0)),
        ],
        out_specs=pl.BlockSpec((bm, HEAD_PAD), lambda i: (i, 0)),
        compiler_params=pltpu.CompilerParams(
            dimension_semantics=("parallel",)),
    )(x, w1b, w2b, whb)

    mean = out[:B, :n_actions]
    std = out[:B, n_actions:2 * n_actions]
    return mean, std


def init_params(key, input_dim, fc1_dims, fc2_dims, n_actions):
    """Deterministic synthetic init (shapes match the nn.Linear layers)."""
    ks = jax.random.split(key, 8)

    def lin(kw, kb, fan_in, fan_out):
        bound = 1.0 / jnp.sqrt(fan_in)
        w = jax.random.uniform(kw, (fan_in, fan_out), jnp.float32, -bound, bound)
        b = jax.random.uniform(kb, (1, fan_out), jnp.float32, -bound, bound)
        return w, b

    w1, b1 = lin(ks[0], ks[1], input_dim, fc1_dims)
    w2, b2 = lin(ks[2], ks[3], fc1_dims, fc2_dims)
    wm, bm = lin(ks[4], ks[5], fc2_dims, n_actions)
    ws, bs = lin(ks[6], ks[7], fc2_dims, n_actions)
    return {"w1": w1, "b1": b1, "w2": w2, "b2": b2,
            "wm": wm, "bm": bm, "ws": ws, "bs": bs}


def reference_forward(state, p):
    hp = "highest"
    h1 = jnp.maximum(jnp.dot(state, p["w1"], precision=hp) + p["b1"], 0.0)
    h2 = jnp.maximum(jnp.dot(h1, p["w2"], precision=hp) + p["b2"], 0.0)
    mean = jnp.dot(h2, p["wm"], precision=hp) + p["bm"]
    std = jnp.clip(jnp.dot(h2, p["ws"], precision=hp) + p["bs"], REPARAM_NOISE, 1.0)
    return mean, std


if __name__ == "__main__":
    # Module defaults: fc1_dims=fc2_dims=256, n_actions=2; small batch/input.
    B, D_IN, FC1, FC2, N_ACT = 8, 16, 256, 256, 2

    key = jax.random.PRNGKey(0)
    k_state, k_params = jax.random.split(key)

    state = jax.random.normal(k_state, (B, D_IN), jnp.float32)
    params = init_params(k_params, D_IN, FC1, FC2, N_ACT)
    packed = pack_params(params)

    mean, std = actor_forward(state, packed, n_actions=N_ACT)
    jax.block_until_ready((mean, std))

    # Sanity check against a pure-JAX reference.
    mean_ref, std_ref = reference_forward(state, params)
    assert mean.shape == (B, N_ACT) and std.shape == (B, N_ACT)
    assert jnp.allclose(mean, mean_ref, atol=2e-3, rtol=2e-3)
    assert jnp.allclose(std, std_ref, atol=2e-3, rtol=2e-3)
    # Compare bounds in float32: float32(1e-6) < Python 1e-6, so comparing the
    # clamped value via float(...) against the Python literal would spuriously fail.
    assert bool(jnp.all(std >= jnp.float32(REPARAM_NOISE)))
    assert bool(jnp.all(std <= jnp.float32(1.0)))

    # TODO(synk): sample_normal (Normal rsample + tanh squash + log_prob) stays in
    # host JAX land since it needs RNG sampling outside the deterministic forward.

    print("KERNEL_OK")
</pallas_src>

<mosaic_0001>
module attributes {stable_mosaic.version = 11 : i64} {
  func.func @_actor_kernel(%arg0: i32, %arg1: memref<8x16xf32, #tpu.memory_space<vmem>>, %arg2: memref<24x256xf32, #tpu.memory_space<vmem>>, %arg3: memref<264x256xf32, #tpu.memory_space<vmem>>, %arg4: memref<264x128xf32, #tpu.memory_space<vmem>>, %arg5: memref<8x128xf32, #tpu.memory_space<vmem>>) attributes {dimension_semantics = [#tpu.dimension_semantics<parallel>], iteration_bounds = array<i64: 1>, scalar_prefetch = 0 : i64, scratch_operands = 0 : i64, tpu.core_type = #tpu.core_type<tc>, window_params = [{transform_indices = @transform_0, window_bounds = array<i64: 8, 16>}, {pipeline_mode = #tpu.pipeline_mode<synchronous>, transform_indices = @transform_1, window_bounds = array<i64: 24, 256>}, {pipeline_mode = #tpu.pipeline_mode<synchronous>, transform_indices = @transform_2, window_bounds = array<i64: 264, 256>}, {pipeline_mode = #tpu.pipeline_mode<synchronous>, transform_indices = @transform_3, window_bounds = array<i64: 264, 128>}, {transform_indices = @transform_4, window_bounds = array<i64: 8, 128>}]} {
    %c0 = arith.constant 0 : index
    %c0_0 = arith.constant 0 : index
    %0 = vector.load %arg1[%c0, %c0_0] : memref<8x16xf32, #tpu.memory_space<vmem>>, vector<8x16xf32>
    %c0_1 = arith.constant 0 : index
    %c0_2 = arith.constant 0 : index
    %1 = vector.load %arg2[%c0_1, %c0_2] : memref<24x256xf32, #tpu.memory_space<vmem>>, vector<16x256xf32>
    %cst = arith.constant dense<0.000000e+00> : vector<8x256xf32>
    %2 = tpu.matmul %0, %1, %cst {dimension_numbers = #tpu.dot_dimension_numbers<[1], [0], [0], [1], [0, 0, 1, 1], [], []>} : vector<8x16xf32>, vector<16x256xf32>, vector<8x256xf32> -> vector<8x256xf32>
    %c16 = arith.constant 16 : index
    %c0_3 = arith.constant 0 : index
    %3 = vector.load %arg2[%c16, %c0_3] : memref<24x256xf32, #tpu.memory_space<vmem>>, vector<1x256xf32>
    %4 = vector.broadcast %3 : vector<1x256xf32> to vector<8x256xf32>
    %5 = arith.addf %2, %4 : vector<8x256xf32>
    %cst_4 = arith.constant 0.000000e+00 : f32
    %6 = vector.broadcast %cst_4 : f32 to vector<8x256xf32>
    %7 = arith.maximumf %5, %6 : vector<8x256xf32>
    %c0_5 = arith.constant 0 : index
    %c0_6 = arith.constant 0 : index
    %8 = vector.load %arg3[%c0_5, %c0_6] : memref<264x256xf32, #tpu.memory_space<vmem>>, vector<256x256xf32>
    %cst_7 = arith.constant dense<0.000000e+00> : vector<8x256xf32>
    %9 = tpu.matmul %7, %8, %cst_7 {dimension_numbers = #tpu.dot_dimension_numbers<[1], [0], [0], [1], [0, 0, 1, 1], [], []>} : vector<8x256xf32>, vector<256x256xf32>, vector<8x256xf32> -> vector<8x256xf32>
    %c256 = arith.constant 256 : index
    %c0_8 = arith.constant 0 : index
    %10 = vector.load %arg3[%c256, %c0_8] : memref<264x256xf32, #tpu.memory_space<vmem>>, vector<1x256xf32>
    %11 = vector.broadcast %10 : vector<1x256xf32> to vector<8x256xf32>
    %12 = arith.addf %9, %11 : vector<8x256xf32>
    %cst_9 = arith.constant 0.000000e+00 : f32
    %13 = vector.broadcast %cst_9 : f32 to vector<8x256xf32>
    %14 = arith.maximumf %12, %13 : vector<8x256xf32>
    %c0_10 = arith.constant 0 : index
    %c0_11 = arith.constant 0 : index
    %15 = vector.load %arg4[%c0_10, %c0_11] : memref<264x128xf32, #tpu.memory_space<vmem>>, vector<256x128xf32>
    %cst_12 = arith.constant dense<0.000000e+00> : vector<8x128xf32>
    %16 = tpu.matmul %14, %15, %cst_12 {dimension_numbers = #tpu.dot_dimension_numbers<[1], [0], [0], [1], [0, 0, 1, 1], [], []>} : vector<8x256xf32>, vector<256x128xf32>, vector<8x128xf32> -> vector<8x128xf32>
    %c256_13 = arith.constant 256 : index
    %c0_14 = arith.constant 0 : index
    %17 = vector.load %arg4[%c256_13, %c0_14] : memref<264x128xf32, #tpu.memory_space<vmem>>, vector<1x128xf32>
    %18 = vector.broadcast %17 : vector<1x128xf32> to vector<8x128xf32>
    %19 = arith.addf %16, %18 : vector<8x128xf32>
    %20 = tpu.iota {dimensions = array<i32: 1>} : vector<8x128xi32>
    %c2_i32 = arith.constant 2 : i32
    %21 = vector.broadcast %c2_i32 : i32 to vector<8x128xi32>
    %22 = arith.cmpi sge, %20, %21 : vector<8x128xi32>
    %c4_i32 = arith.constant 4 : i32
    %23 = vector.broadcast %c4_i32 : i32 to vector<8x128xi32>
    %24 = arith.cmpi slt, %20, %23 : vector<8x128xi32>
    %25 = arith.andi %22, %24 : vector<8x128xi1>
    %cst_15 = arith.constant 9.99999997E-7 : f32
    %cst_16 = arith.constant 1.000000e+00 : f32
    %26 = vector.broadcast %cst_15 : f32 to vector<8x128xf32>
    %27 = arith.maximumf %26, %19 : vector<8x128xf32>
    %28 = vector.broadcast %cst_16 : f32 to vector<8x128xf32>
    %29 = arith.minimumf %28, %27 : vector<8x128xf32>
    %30 = arith.select %25, %29, %19 : vector<8x128xi1>, vector<8x128xf32>
    %c0_17 = arith.constant 0 : index
    %c0_18 = arith.constant 0 : index
    %31 = vector.load %arg5[%c0_17, %c0_18] : memref<8x128xf32, #tpu.memory_space<vmem>>, vector<8x128xf32>
    tpu.vector_store %arg5[%c0_17, %c0_18], %30 {strides = array<i32>} : memref<8x128xf32, #tpu.memory_space<vmem>>, vector<8x128xf32>,
    return
  }
  func.func @transform_0(%arg0: i32) -> (i32, i32) {
    %c0_i32 = arith.constant 0 : i32
    %c0_i32_0 = arith.constant 0 : i32
    return %arg0, %c0_i32 : i32, i32
  }
  func.func @transform_1(%arg0: i32) -> (i32, i32) {
    %c0_i32 = arith.constant 0 : i32
    %c0_i32_0 = arith.constant 0 : i32
    %c0_i32_1 = arith.constant 0 : i32
    return %c0_i32, %c0_i32_0 : i32, i32
  }
  func.func @transform_2(%arg0: i32) -> (i32, i32) {
    %c0_i32 = arith.constant 0 : i32
    %c0_i32_0 = arith.constant 0 : i32
    %c0_i32_1 = arith.constant 0 : i32
    return %c0_i32, %c0_i32_0 : i32, i32
  }
  func.func @transform_3(%arg0: i32) -> (i32, i32) {
    %c0_i32 = arith.constant 0 : i32
    %c0_i32_0 = arith.constant 0 : i32
    %c0_i32_1 = arith.constant 0 : i32
    return %c0_i32, %c0_i32_0 : i32, i32
  }
  func.func @transform_4(%arg0: i32) -> (i32, i32) {
    %c0_i32 = arith.constant 0 : i32
    %c0_i32_0 = arith.constant 0 : i32
    return %arg0, %c0_i32 : i32, i32
  }
}

</mosaic_0001>

<bundles_post_ra>
// kernel: actor_forward.1
= control target key start
LH: loop header
LB: loop body
LE: loop exit
PB: predicated region body
PF: predicated region fallthrough
CT: control target
= control target key end

     0   :  { %9 = vsyncpa [#allocation3], 0  ;;  %s769_s0 = inlined_call_operand.hbm [shape: f32[8,16], index: 0, kind: input, shape index: {}]   ;;  %s770_s1 = inlined_call_operand.hbm [shape: f32[24,256], index: 1, kind: input, shape index: {}]   ;;  %s771_s2 = inlined_call_operand.hbm [shape: f32[264,256], index: 2, kind: input, shape index: {}]   ;;  %s772_s3 = inlined_call_operand.hbm [shape: f32[264,128], index: 3, kind: input, shape index: {}]   ;;  %s773_s4 = inlined_call_operand.vmem [shape: f32[8,128], index: 4, kind: output, shape index: {}]  }
   0x1   :  { %10 = vsyncpa [#allocation5], 0 }
   0x2   :  { %11 = vsyncpa [#allocation8], 0  ;;  %s678_s15 = smov [#allocation4]   ;;  %s584_s19 = scalar_lea.hbm %s770_s1, 768 }
   0x3   :  { %s27_s16 = sshll.u32 %s678_s15, 4  ;;  %p585_p0 = scmp.ne.s32.totalorder %s770_s1, %s584_s19  ;;  %s28_s16 = int_to_ptr.vmem [resolvable:$true] %s27_s16 }
   0x4   :  { %p588_p1 = scmp.lt.u32.totalorder %s584_s19, %s770_s1 }
   0x6   :  { %p590_p2 = pnand %p588_p1, %p585_p0 }
   0x8   :  { %593 = shalt.err (!%p590_p2)
}
   0x9   :  { %s594_s24 = scalar_lea.vmem %s28_s16, 768  ;;  %p599_p4 = scmp.lt.s32.totalorder %s28_s16, %s28_s16 }
   0xa   :  { %p595_p3 = scmp.ne.s32.totalorder %s28_s16, %s594_s24  ;;  %p600_p5 = scmp.lt.s32.totalorder %s594_s24, %s594_s24 }
   0xc   :  { %p601_p6 = por %p600_p5, %p599_p4 }
   0xe   :  { %p602_p7 = pnand %p601_p6, %p595_p3 }
  0x10   :  { %605 = shalt.err (!%p602_p7)
}
  0x11   :  { %s679_s25 = smov 256   ;;  %s680_s26 = smov 16  }
  0x12   :  { %33 = dma.hbm_to_vmem [thread:$0]  %s770_s1, 768, %s28_s16, [#allocation5], %s679_s25, %s679_s25, %s680_s26  }
  0x13   :  { %s681_s29 = smov [#allocation2]   ;;  %s682_s5 = smov [#allocation6]  }
  0x14   :  { %s18_s30 = sshll.u32 %s681_s29, 4  ;;  %s39_s6 = sshll.u32 %s682_s5, 4  ;;  %s19_s30 = int_to_ptr.vmem [resolvable:$true] %s18_s30  ;;  %s40_s6 = int_to_ptr.vmem [resolvable:$true] %s39_s6 }
  0x15   :  { %s606_s9 = scalar_lea.hbm %s769_s0, 128 }
  0x16   :  { %p607_p8 = scmp.ne.s32.totalorder %s769_s0, %s606_s9  ;;  %p610_p9 = scmp.lt.u32.totalorder %s606_s9, %s769_s0 }
  0x18   :  { %p612_p10 = pnand %p610_p9, %p607_p8 }
  0x1a   :  { %615 = shalt.err (!%p612_p10)
}
  0x1b   :  { %s616_s1 = scalar_lea.vmem %s19_s30, 128  ;;  %p621_p12 = scmp.lt.s32.totalorder %s19_s30, %s19_s30 }
  0x1c   :  { %p617_p11 = scmp.ne.s32.totalorder %s19_s30, %s616_s1  ;;  %p622_p13 = scmp.lt.s32.totalorder %s616_s1, %s616_s1 }
  0x1e   :  { %p623_p0 = por %p622_p13, %p621_p12 }
  0x20   :  { %p624_p1 = pnand %p623_p0, %p617_p11 }
  0x22   :  { %627 = shalt.err (!%p624_p1)
}
  0x23   :  { %21 = dma.hbm_to_vmem [thread:$0]  %s769_s0, 128, %s19_s30, [#allocation3]  }
  0x24   :  { %s628_s18 = scalar_lea.hbm %s771_s2, 8448 }
  0x25   :  { %p629_p2 = scmp.ne.s32.totalorder %s771_s2, %s628_s18  ;;  %p632_p3 = scmp.lt.u32.totalorder %s628_s18, %s771_s2 }
  0x27   :  { %p634_p4 = pnand %p632_p3, %p629_p2 }
  0x29   :  { %637 = shalt.err (!%p634_p4)
}
  0x2a   :  { %s638_s23 = scalar_lea.vmem %s40_s6, 8448  ;;  %p643_p6 = scmp.lt.s32.totalorder %s40_s6, %s40_s6 }
  0x2b   :  { %p639_p5 = scmp.ne.s32.totalorder %s40_s6, %s638_s23  ;;  %p644_p7 = scmp.lt.s32.totalorder %s638_s23, %s638_s23 }
  0x2d   :  { %p645_p8 = por %p644_p7, %p643_p6 }
  0x2f   :  { %p646_p9 = pnand %p645_p8, %p639_p5 }
  0x31   :  { %649 = shalt.err (!%p646_p9)
}
  0x32   :  { %45 = dma.hbm_to_vmem [thread:$0]  %s771_s2, 8448, %s40_s6, [#allocation5], %s679_s25, %s679_s25, %s680_s26  }
  0x33   :  { %s683_s27 = smov [#allocation7]   ;;  %s650_s5 = scalar_lea.hbm %s772_s3, 4224 }
  0x34   :  { %s51_s28 = sshll.u32 %s683_s27, 4  ;;  %p651_p10 = scmp.ne.s32.totalorder %s772_s3, %s650_s5  ;;  %s52_s28 = int_to_ptr.vmem [resolvable:$true] %s51_s28 }
  0x35   :  { %p654_p11 = scmp.lt.u32.totalorder %s650_s5, %s772_s3 }
  0x37   :  { %p656_p12 = pnand %p654_p11, %p651_p10 }
  0x39   :  { %659 = shalt.err (!%p656_p12)
}
  0x3a   :  { %s660_s11 = scalar_lea.vmem %s52_s28, 4224  ;;  %p665_p0 = scmp.lt.s32.totalorder %s52_s28, %s52_s28 }
  0x3b   :  { %p661_p13 = scmp.ne.s32.totalorder %s52_s28, %s660_s11  ;;  %p666_p1 = scmp.lt.s32.totalorder %s660_s11, %s660_s11 }
  0x3d   :  { %p667_p2 = por %p666_p1, %p665_p0 }
  0x3f   :  { %p668_p3 = pnand %p667_p2, %p661_p13 }
  0x41   :  { %671 = shalt.err (!%p668_p3)
}
  0x42   :  { %s684_s2 = smov 128   ;;  %s685_s25 = smov 8  }
  0x43   :  { %57 = dma.hbm_to_vmem [thread:$0]  %s772_s3, 4224, %s52_s28, [#allocation8], %s684_s2, %s684_s2, %s685_s25  }
  0x44   :  { %672 = dma.done.wait [#allocation3], 128  }
  0x45   :  { %673 = vsyncadd [#allocation3], 4294967168 }
  0x46   :  { %674 = dma.done.wait [#allocation5], 9216  }
  0x47   :  { %675 = vsyncadd [#allocation5], 4294958080 }
  0x48   :  { %676 = dma.done.wait [#allocation8], 4224  }
  0x49   :  { %677 = vsyncadd [#allocation8], 4294963072  ;;  %v686_v0 = vmov 0.0   ;;  %v72_v1 = vld [vmem:[#allocation4 + $0x8] sm:$0xff]  ;;  %v74_v2 = vld [vmem:[#allocation4 + $0x18] sm:$0xff]  ;;  %vm88_vm0 = vcmask 130048  }
  0x4a   :  { %156 = vmatprep.mubr.f32.mxu0 %v686_v0  ;;  %v71_v3 = vld [vmem:[#allocation4] sm:$0xff]  ;;  %v475_v4 = vpack.c.bf16 %v74_v2, %v72_v1  ;;  %v73_v5 = vld [vmem:[#allocation4 + $0x10] sm:$0xff]  ;;  %v166_v6 = vld [vmem:[#allocation6 + $0x8] sm:$0xff] }
  0x4b   :  { %v477_v7 = vpack.c.bf16 %v73_v5, %v71_v3  ;;  %v70_v8 = vld [vmem:[#allocation2] sm:$0xff]  ;;  %v168_v9 = vld [vmem:[#allocation6 + $0x18] sm:$0xff]  ;;  %v165_v10 = vld [vmem:[#allocation6] sm:$0xff] }
  0x4c   :  { %v167_v11 = vld [vmem:[#allocation6 + $0x10] sm:$0xff]  ;;  %476 = vmatprep.subr.bf16.mxu0 %v475_v4  ;;  %v479_v12 = vpack.c.bf16 %v168_v9, %v166_v6  ;;  %v170_v14 = vld [vmem:[#allocation6 + $0x28] sm:$0xff]  ;;  %v172_v15 = vld [vmem:[#allocation6 + $0x38] sm:$0xff] }
  0x4d   :  { %v481_v13 = vpack.c.bf16 %v167_v11, %v165_v10  ;;  %v169_v16 = vld [vmem:[#allocation6 + $0x20] sm:$0xff]  ;;  %478 = vmatpush1.bf16.msra.mxu0 %v477_v7  ;;  %v483_v17 = vpack.c.bf16 %v172_v15, %v170_v14  ;;  %v171_v18 = vld [vmem:[#allocation6 + $0x30] sm:$0xff]  ;;  %v174_v19 = vld [vmem:[#allocation6 + $0x48] sm:$0xff] }
  0x4e   :  { %v176_v20 = vld [vmem:[#allocation6 + $0x58] sm:$0xff]  ;;  %480 = vmatprep.subr.bf16.mxu1 %v479_v12  ;;  %v485_v21 = vpack.c.bf16 %v171_v18, %v169_v16  ;;  %v173_v23 = vld [vmem:[#allocation6 + $0x40] sm:$0xff]  ;;  %v175_v24 = vld [vmem:[#allocation6 + $0x50] sm:$0xff] }
  0x4f   :  { %482 = vmatpush1.bf16.msra.mxu1 %v481_v13  ;;  %v487_v22 = vpack.c.bf16 %v176_v20, %v174_v19  ;;  %v178_v25 = vld [vmem:[#allocation6 + $0x68] sm:$0xff]  ;;  %v180_v26 = vld [vmem:[#allocation6 + $0x78] sm:$0xff]  ;;  %v489_v27 = vpack.c.bf16 %v175_v24, %v173_v23  ;;  %v177_v29 = vld [vmem:[#allocation6 + $0x60] sm:$0xff] }
  0x50   :  { %438 = vmatmul.mubr.msk.f32.vlgmr.msra.gmra.mrb[0].mxu0 %vm88_vm0, %v70_v8  ;;  %484 = vmatprep.subr.bf16.mxu1 %v483_v17  ;;  %v491_v28 = vpack.c.bf16 %v180_v26, %v178_v25  ;;  %v179_v30 = vld [vmem:[#allocation6 + $0x70] sm:$0xff]  ;;  %v182_v31 = vld [vmem:[#allocation6 + $0x88] sm:$0xff]  ;;  %v184_v32 = vld [vmem:[#allocation6 + $0x98] sm:$0xff] }
  0x51   :  { %v493_v33 = vpack.c.bf16 %v179_v30, %v177_v29  ;;  %v495_v34 = vpack.c.bf16 %v184_v32, %v182_v31  ;;  %v181_v35 = vld [vmem:[#allocation6 + $0x80] sm:$0xff]  ;;  %v183_v36 = vld [vmem:[#allocation6 + $0x90] sm:$0xff]  ;;  %v186_v37 = vld [vmem:[#allocation6 + $0xa8] sm:$0xff] }
  0x52   :  { %v188_v38 = vld [vmem:[#allocation6 + $0xb8] sm:$0xff]  ;;  %v497_v39 = vpack.c.bf16 %v183_v36, %v181_v35  ;;  %v185_v41 = vld [vmem:[#allocation6 + $0xa0] sm:$0xff]  ;;  %v187_v42 = vld [vmem:[#allocation6 + $0xb0] sm:$0xff] }
  0x53   :  { %486 = vmatpush1.bf16.msra.mxu1 %v485_v21  ;;  %v499_v40 = vpack.c.bf16 %v188_v38, %v186_v37  ;;  %v190_v43 = vld [vmem:[#allocation6 + $0xc8] sm:$0xff]  ;;  %v192_v44 = vld [vmem:[#allocation6 + $0xd8] sm:$0xff]  ;;  %v501_v45 = vpack.c.bf16 %v187_v42, %v185_v41  ;;  %v189_v47 = vld [vmem:[#allocation6 + $0xc0] sm:$0xff] }
  0x54   :  { %488 = vmatprep.subr.bf16.mxu1 %v487_v22  ;;  %v503_v46 = vpack.c.bf16 %v192_v44, %v190_v43  ;;  %v191_v48 = vld [vmem:[#allocation6 + $0xd0] sm:$0xff]  ;;  %v194_v49 = vld [vmem:[#allocation6 + $0xe8] sm:$0xff]  ;;  %v196_v50 = vld [vmem:[#allocation6 + $0xf8] sm:$0xff] }
  0x55   :  { %v505_v51 = vpack.c.bf16 %v191_v48, %v189_v47  ;;  %v507_v52 = vpack.c.bf16 %v196_v50, %v194_v49  ;;  %v193_v53 = vld [vmem:[#allocation6 + $0xe0] sm:$0xff]  ;;  %v195_v54 = vld [vmem:[#allocation6 + $0xf0] sm:$0xff]  ;;  %v198_v55 = vld [vmem:[#allocation6 + $0x108] sm:$0xff] }
  0x56   :  { %v200_v56 = vld [vmem:[#allocation6 + $0x118] sm:$0xff]  ;;  %v509_v57 = vpack.c.bf16 %v195_v54, %v193_v53  ;;  %v197_v59 = vld [vmem:[#allocation6 + $0x100] sm:$0xff]  ;;  %v199_v60 = vld [vmem:[#allocation6 + $0x110] sm:$0xff] }
  0x57   :  { %490 = vmatpush1.bf16.msra.mxu1 %v489_v27  ;;  %v511_v58 = vpack.c.bf16 %v200_v56, %v198_v55  ;;  %v202_v61 = vld [vmem:[#allocation6 + $0x128] sm:$0xff]  ;;  %v204_v62 = vld [vmem:[#allocation6 + $0x138] sm:$0xff]  ;;  %v513_v63 = vpack.c.bf16 %v199_v60, %v197_v59  ;;  %v201_v1 = vld [vmem:[#allocation6 + $0x120] sm:$0xff] }
  0x58   :  { %492 = vmatprep.subr.bf16.mxu1 %v491_v28  ;;  %v515_v0 = vpack.c.bf16 %v204_v62, %v202_v61  ;;  %v203_v2 = vld [vmem:[#allocation6 + $0x130] sm:$0xff]  ;;  %v206_v3 = vld [vmem:[#allocation6 + $0x148] sm:$0xff]  ;;  %v208_v4 = vld [vmem:[#allocation6 + $0x158] sm:$0xff] }
  0x59   :  { %v517_v5 = vpack.c.bf16 %v203_v2, %v201_v1  ;;  %v519_v6 = vpack.c.bf16 %v208_v4, %v206_v3  ;;  %v205_v7 = vld [vmem:[#allocation6 + $0x140] sm:$0xff]  ;;  %v207_v8 = vld [vmem:[#allocation6 + $0x150] sm:$0xff]  ;;  %v210_v9 = vld [vmem:[#allocation6 + $0x168] sm:$0xff] }
  0x5a   :  { %v212_v10 = vld [vmem:[#allocation6 + $0x178] sm:$0xff]  ;;  %v521_v11 = vpack.c.bf16 %v207_v8, %v205_v7  ;;  %v209_v13 = vld [vmem:[#allocation6 + $0x160] sm:$0xff]  ;;  %v211_v14 = vld [vmem:[#allocation6 + $0x170] sm:$0xff] }
  0x5b   :  { %494 = vmatpush1.bf16.msra.mxu1 %v493_v33  ;;  %v523_v12 = vpack.c.bf16 %v212_v10, %v210_v9  ;;  %v214_v15 = vld [vmem:[#allocation6 + $0x188] sm:$0xff]  ;;  %v216_v16 = vld [vmem:[#allocation6 + $0x198] sm:$0xff]  ;;  %v525_v17 = vpack.c.bf16 %v211_v14, %v209_v13  ;;  %v213_v19 = vld [vmem:[#allocation6 + $0x180] sm:$0xff] }
  0x5c   :  { %496 = vmatprep.subr.bf16.mxu1 %v495_v34  ;;  %v527_v18 = vpack.c.bf16 %v216_v16, %v214_v15  ;;  %v215_v20 = vld [vmem:[#allocation6 + $0x190] sm:$0xff]  ;;  %v218_v21 = vld [vmem:[#allocation6 + $0x1a8] sm:$0xff]  ;;  %v220_v22 = vld [vmem:[#allocation6 + $0x1b8] sm:$0xff]  ;;  %v78_v15 = vlaneseq }
  0x5d   :  { %v529_v23 = vpack.c.bf16 %v215_v20, %v213_v19  ;;  %v531_v24 = vpack.c.bf16 %v220_v22, %v218_v21  ;;  %v217_v25 = vld [vmem:[#allocation6 + $0x1a0] sm:$0xff]  ;;  %v219_v26 = vld [vmem:[#allocation6 + $0x1b0] sm:$0xff]  ;;  %v222_v27 = vld [vmem:[#allocation6 + $0x1c8] sm:$0xff] }
  0x5e   :  { %v224_v28 = vld [vmem:[#allocation6 + $0x1d8] sm:$0xff]  ;;  %v533_v29 = vpack.c.bf16 %v219_v26, %v217_v25  ;;  %v221_v31 = vld [vmem:[#allocation6 + $0x1c0] sm:$0xff]  ;;  %v223_v32 = vld [vmem:[#allocation6 + $0x1d0] sm:$0xff]  ;;  %v79_v16 = vshrl.u32 %v78_v15, 7 }
  0x5f   :  { %498 = vmatpush1.bf16.msra.mxu1 %v497_v39  ;;  %v535_v30 = vpack.c.bf16 %v224_v28, %v222_v27  ;;  %v537_v33 = vpack.c.bf16 %v223_v32, %v221_v31  ;;  %v226_v34 = vld [vmem:[#allocation6 + $0x1e8] sm:$0xff]  ;;  %v228_v35 = vld [vmem:[#allocation6 + $0x1f8] sm:$0xff]  ;;  %v225_v37 = vld [vmem:[#allocation6 + $0x1e0] sm:$0xff] }
  0x60   :  { %500 = vmatprep.subr.bf16.mxu1 %v499_v40  ;;  %v539_v36 = vpack.c.bf16 %v228_v35, %v226_v34  ;;  %v227_v38 = vld [vmem:[#allocation6 + $0x1f0] sm:$0xff]  ;;  %v332_v41 = vld [vmem:[#allocation7 + $0x88] sm:$0xff]  ;;  %v317_v49 = vld [vmem:[#allocation7 + $0x10] sm:$0xff]  ;;  %v84_v19 = vsub.s32 1, %v79_v16 }
  0x61   :  { %v541_v39 = vpack.c.bf16 %v227_v38, %v225_v37  ;;  %v331_v40 = vld [vmem:[#allocation7 + $0x80] sm:$0xff]  ;;  %v316_v44 = vld [vmem:[#allocation7 + $0x8] sm:$0xff]  ;;  %v318_v50 = vld [vmem:[#allocation7 + $0x18] sm:$0xff] }
  0x62   :  { %v315_v42 = vld [vmem:[#allocation7] sm:$0xff]  ;;  %v543_v43 = vpack.c.bf16 %v332_v41, %v331_v40  ;;  %v549_v53 = vpack.c.bf16 %v318_v50, %v317_v49  ;;  %v320_v56 = vld [vmem:[#allocation7 + $0x28] sm:$0xff]  ;;  %v321_v61 = vld [vmem:[#allocation7 + $0x30] sm:$0xff] }
  0x63   :  { %502 = vmatpush1.bf16.msra.mxu1 %v501_v45  ;;  %v333_v45 = vld [vmem:[#allocation7 + $0x90] sm:$0xff]  ;;  %v545_v47 = vpack.c.bf16 %v316_v44, %v315_v42  ;;  %v319_v55 = vld [vmem:[#allocation7 + $0x20] sm:$0xff]  ;;  %v322_v62 = vld [vmem:[#allocation7 + $0x38] sm:$0xff] }
  0x64   :  { %504 = vmatprep.subr.bf16.mxu1 %v503_v46  ;;  %v334_v46 = vld [vmem:[#allocation7 + $0x98] sm:$0xff]  ;;  %544 = vmatprep.subr.bf16.mxu0 %v543_v43  ;;  %v553_v59 = vpack.c.bf16 %v320_v56, %v319_v55  ;;  %v557_v1 = vpack.c.bf16 %v322_v62, %v321_v61  ;;  %v323_v3 = vld [vmem:[#allocation7 + $0x40] sm:$0xff]  ;;  %v324_v4 = vld [vmem:[#allocation7 + $0x48] sm:$0xff] }
  0x65   :  { %v547_v48 = vpack.c.bf16 %v334_v46, %v333_v45  ;;  %546 = vmatpush3.bf16.msra.mxu0 %v545_v47  ;;  %v561_v7 = vpack.c.bf16 %v324_v4, %v323_v3  ;;  %v325_v9 = vld [vmem:[#allocation7 + $0x50] sm:$0xff]  ;;  %v326_v10 = vld [vmem:[#allocation7 + $0x58] sm:$0xff]  ;;  %v327_v28 = vld [vmem:[#allocation7 + $0x60] sm:$0xff]  ;;  %v423_v46 = vand.u32 127, %v78_v15 }
  0x66   :  { %v565_v13 = vpack.c.bf16 %v326_v10, %v325_v9  ;;  %v345_v31 = vld [vmem:[#allocation7 + $0xf0] sm:$0xff]  ;;  %v346_v32 = vld [vmem:[#allocation7 + $0xf8] sm:$0xff] }
  0x67   :  { %506 = vmatpush1.bf16.msra.mxu1 %v505_v51  ;;  %v335_v51 = vld [vmem:[#allocation7 + $0xa0] sm:$0xff]  ;;  %548 = vmatprep.subr.bf16.mxu0 %v547_v48  ;;  %v329_v34 = vld [vmem:[#allocation7 + $0x70] sm:$0xff]  ;;  %v330_v35 = vld [vmem:[#allocation7 + $0x78] sm:$0xff]  ;;  %vm424_vm1 = vcmp.ge.s32.totalorder %v423_v46, 2  ;;  %vm425_vm2 = vcmp.lt.s32.totalorder %v423_v46, 4 }
  0x68   :  { %508 = vmatprep.subr.bf16.mxu1 %v507_v52  ;;  %v336_v52 = vld [vmem:[#allocation7 + $0xa8] sm:$0xff]  ;;  %v230_v37 = vld [vmem:[#allocation6 + $0x200] ss:$8 sm:$0x3]  ;;  %v439_v48 = vld [vmem:[#allocation7 + $0x100] ss:$0 sm:$0xff] }
  0x69   :  { %v551_v54 = vpack.c.bf16 %v336_v52, %v335_v51  ;;  %550 = vmatpush3.bf16.msra.mxu0 %v549_v53  ;;  %vm426_vm3 = vmand %vm424_vm1, %vm425_vm2 }
  0x6b   :  { %510 = vmatpush1.bf16.msra.mxu1 %v509_v57  ;;  %v337_v57 = vld [vmem:[#allocation7 + $0xb0] sm:$0xff]  ;;  %552 = vmatprep.subr.bf16.mxu0 %v551_v54 }
  0x6c   :  { %512 = vmatprep.subr.bf16.mxu1 %v511_v58  ;;  %v338_v58 = vld [vmem:[#allocation7 + $0xb8] sm:$0xff] }
  0x6d   :  { %v555_v60 = vpack.c.bf16 %v338_v58, %v337_v57  ;;  %554 = vmatpush3.bf16.msra.mxu0 %v553_v59 }
  0x6f   :  { %514 = vmatpush1.bf16.msra.mxu1 %v513_v63  ;;  %v339_v63 = vld [vmem:[#allocation7 + $0xc0] sm:$0xff]  ;;  %556 = vmatprep.subr.bf16.mxu0 %v555_v60 }
  0x70   :  { %516 = vmatprep.subr.bf16.mxu1 %v515_v0  ;;  %v340_v0 = vld [vmem:[#allocation7 + $0xc8] sm:$0xff] }
  0x71   :  { %v559_v2 = vpack.c.bf16 %v340_v0, %v339_v63  ;;  %558 = vmatpush3.bf16.msra.mxu0 %v557_v1 }
  0x73   :  { %518 = vmatpush1.bf16.msra.mxu1 %v517_v5  ;;  %v341_v5 = vld [vmem:[#allocation7 + $0xd0] sm:$0xff]  ;;  %560 = vmatprep.subr.bf16.mxu0 %v559_v2 }
  0x74   :  { %520 = vmatprep.subr.bf16.mxu1 %v519_v6  ;;  %v342_v6 = vld [vmem:[#allocation7 + $0xd8] sm:$0xff] }
  0x75   :  { %v563_v8 = vpack.c.bf16 %v342_v6, %v341_v5  ;;  %562 = vmatpush3.bf16.msra.mxu0 %v561_v7 }
  0x77   :  { %522 = vmatpush1.bf16.msra.mxu1 %v521_v11  ;;  %v343_v11 = vld [vmem:[#allocation7 + $0xe0] sm:$0xff]  ;;  %564 = vmatprep.subr.bf16.mxu0 %v563_v8 }
  0x78   :  { %524 = vmatprep.subr.bf16.mxu1 %v523_v12  ;;  %v344_v12 = vld [vmem:[#allocation7 + $0xe8] sm:$0xff] }
  0x79   :  { %v567_v14 = vpack.c.bf16 %v344_v12, %v343_v11  ;;  %566 = vmatpush3.bf16.msra.mxu0 %v565_v13 }
  0x7b   :  { %526 = vmatpush1.bf16.msra.mxu1 %v525_v17  ;;  %568 = vmatprep.subr.bf16.mxu0 %v567_v14  ;;  %v80_v17 = vsub.s32 0, %v79_v16 }
  0x7c   :  { %528 = vmatprep.subr.bf16.mxu1 %v527_v18  ;;  %v76_v18 = vld [vmem:[#allocation4 + $0x20] ss:$8 sm:$0x3] }
  0x7d   :  { %v81_v20 = vrot.slane %v76_v18, %v80_v17  ;;  %v85_v21 = vrot.slane %v76_v18, %v84_v19  ;;  %v235_v38 = vrot.slane %v230_v37, %v80_v17 }
  0x7f   :  { %530 = vmatpush1.bf16.msra.mxu1 %v529_v23 }
  0x80   :  { %532 = vmatprep.subr.bf16.mxu1 %v531_v24 }
  0x83   :  { %534 = vmatpush1.bf16.msra.mxu1 %v533_v29  ;;  %v328_v29 = vld [vmem:[#allocation7 + $0x68] sm:$0xff] }
  0x84   :  { %536 = vmatprep.subr.bf16.mxu1 %v535_v30  ;;  %v569_v30 = vpack.c.bf16 %v328_v29, %v327_v28 }
  0x86   :  { %570 = vmatpush3.bf16.msra.mxu0 %v569_v30 }
  0x87   :  { %538 = vmatpush1.bf16.msra.mxu1 %v537_v33  ;;  %v571_v33 = vpack.c.bf16 %v346_v32, %v345_v31 }
  0x88   :  { %540 = vmatprep.subr.bf16.mxu1 %v539_v36  ;;  %v573_v36 = vpack.c.bf16 %v330_v35, %v329_v34 }
  0x89   :  { %572 = vmatprep.subr.bf16.mxu0 %v571_v33 }
  0x8a   :  { %574 = vmatpush3.bf16.msra.mxu0 %v573_v36 }
  0x8b   :  { %542 = vmatpush1.bf16.msra.mxu1 %v541_v39  ;;  %v239_v39 = vrot.slane %v230_v37, %v84_v19 }
 0x123   :  { %v158_v22 = vpop.f32.mrb[0].mxu0 }
 0x124   :  { %v159_v23 = vadd.f32 %v158_v22, %v81_v20  ;;  %v160_v24 = vpop.f32.mrb[1].mxu0 }
 0x125   :  { %v161_v25 = vadd.f32 %v160_v24, %v85_v21 }
 0x126   :  { %v163_v27 = vmax.f32 %v159_v23, 0.0 }
 0x127   :  { %v164_v26 = vmax.f32 %v161_v25, 0.0 }
 0x129   :  { %306 = vmatprep.mubr.f32.mxu1 %v164_v26 }
 0x12a   :  { %307 = vmatmul.mubr.f32.vlgmr.msra.gmra.mrb[0].mxu1 %v163_v27 }
 0x1fd   :  { %v308_v40 = vpop.f32.mrb[0].mxu1 }
 0x1fe   :  { %v309_v41 = vadd.f32 %v308_v40, %v235_v38  ;;  %v310_v42 = vpop.f32.mrb[1].mxu1 }
 0x1ff   :  { %v311_v43 = vadd.f32 %v310_v42, %v239_v39 }
 0x200   :  { %v313_v45 = vmax.f32 %v309_v41, 0.0 }
 0x201   :  { %v314_v44 = vmax.f32 %v311_v43, 0.0 }
 0x203   :  { %416 = vmatprep.mubr.f32.mxu0 %v314_v44 }
 0x204   :  { %417 = vmatmul.mubr.f32.vlgmr.msra.gmra.mrb[2].mxu0 %v313_v45 }
 0x2d7   :  { %v472_v47 = vpop.f32.mrb[2].mxu0 }
 0x2d8   :  { %v473_v49 = vpop.f32.mrb[3].mxu0 }
 0x2d9   :  { %v474_v50 = vadd.f32 %v473_v49, %v472_v47 }
 0x2db   :  { %v419_v51 = vadd.f32 %v474_v50, %v439_v48 }
 0x2dd   :  { %v427_v52 = vmax.f32 %v419_v51, 1e-06 }
 0x2df   :  { %v428_v53 = vmin.f32 %v427_v52, 1.0 }
 0x2e1   :  { %v429_v54 = vsel %vm426_vm3, %v428_v53, %v419_v51 }
 0x2e2   :  { %430 = vst [vmem:[%s773_s4] sm:$0xff] %v429_v54 }
 0x2e3   :  { %435 = vsyncpa [#allocation3], 1 }
 0x2e4   :  { %436 = vsyncpa [#allocation5], 1 }
 0x2e5   :  { %437 = vsyncpa [#allocation8], 1 }

</bundles_post_ra>
